<compile_context>
chip_gen: v6e
topology: v6e:2x2x1
jax: 0.10.0
libtpu: 0.0.40
codegen_flags: <defaults>
</compile_context>

<pallas_src>
import functools

import jax
import jax.numpy as jnp
from jax.experimental import pallas as pl
from jax.experimental.pallas import tpu as pltpu


def _wlp_kernel(*refs, n_layers):
    # refs = (w_ref, x_ref_0, ..., x_ref_{n_layers-1}, o_ref)
    w_ref = refs[0]
    x_refs = refs[1:1 + n_layers]
    o_ref = refs[1 + n_layers]

    # Weighted sum over layers; weights are already normalized by sum(w).
    acc = x_refs[0][...].astype(jnp.float32) * w_ref[0]
    for l in range(1, n_layers):
        acc = acc + x_refs[l][...].astype(jnp.float32) * w_ref[l]
    o_ref[...] = acc.astype(o_ref.dtype)


def _choose_layout(n_elems, fallback_shape):
    """Lane-dense 2D view (rows, cols) with cols a multiple of 128."""
    for cols in (512, 256, 128):
        if n_elems % cols == 0:
            return n_elems // cols, cols
    # Ragged total size: keep the natural [B*S, H] layout (last dim = full H).
    return fallback_shape


def _choose_row_tile(rows, cols, n_layers, in_bytes, out_bytes):
    """Largest row tile (multiple of 8, divides rows) under a VMEM budget."""
    # Per grid step: n_layers double-buffered input tiles + double-buffered
    # output tile + one f32 accumulator temp.
    budget = 12 * 1024 * 1024  # stays under v5e's 16 MiB default scoped VMEM
    per_row = cols * (n_layers * 2 * in_bytes + 2 * out_bytes + 4)
    max_rows = max(8, budget // max(per_row, 1))
    for cand in (4096, 2048, 1024, 512, 256, 128, 64, 32, 16, 8):
        if cand <= rows and cand <= max_rows and rows % cand == 0:
            return cand
    return rows  # small / ragged arrays: full extent (block == full dims)


def weighted_layer_pooling(all_hidden_states, layer_weights, layer_start=4):
    """all_hidden_states: list/tuple of (L+1) arrays of shape [B, S, H]."""
    layers = list(all_hidden_states[layer_start:])  # no stack -> no HBM copy
    n_layers = len(layers)
    B, S, H = layers[0].shape
    out_dtype = layers[0].dtype
    n_elems = B * S * H

    # Fold normalization into the per-layer scalar weights (wrapper-side).
    w = layer_weights.astype(jnp.float32)
    w_norm = w / jnp.sum(w)

    rows, cols = _choose_layout(n_elems, (B * S, H))
    xs = [x.reshape(rows, cols) for x in layers]  # contiguous reshape: free view

    in_bytes = jnp.dtype(layers[0].dtype).itemsize
    out_bytes = jnp.dtype(out_dtype).itemsize
    tile_rows = _choose_row_tile(rows, cols, n_layers, in_bytes, out_bytes)
    grid = (rows // tile_rows,)

    data_spec = pl.BlockSpec((tile_rows, cols), lambda i: (i, 0))
    kernel = functools.partial(_wlp_kernel, n_layers=n_layers)

    out2d = pl.pallas_call(
        kernel,
        out_shape=jax.ShapeDtypeStruct((rows, cols), out_dtype),
        grid_spec=pltpu.PrefetchScalarGridSpec(
            num_scalar_prefetch=0,
            grid=grid,
            in_specs=[pl.BlockSpec(memory_space=pltpu.SMEM)]
                     + [data_spec] * n_layers,
            out_specs=data_spec,
        ),
        compiler_params=pltpu.CompilerParams(
            # Pure elementwise over distinct output tiles -> shard across TCs.
            dimension_semantics=("parallel",),
        ),
    )(w_norm, *xs)

    return out2d.reshape(B, S, H)


def weighted_layer_pooling_ref(all_hidden_states, layer_weights, layer_start=4):
    stacked = jnp.stack(all_hidden_states)
    sel = stacked[layer_start:]
    wf = layer_weights[:, None, None, None]
    return (wf * sel).sum(axis=0) / layer_weights.sum()


if __name__ == "__main__":
    num_hidden_layers = 12
    layer_start = 4
    B, S, H = 2, 8, 32
    n_sel = num_hidden_layers + 1 - layer_start

    key = jax.random.PRNGKey(0)
    keys = jax.random.split(key, num_hidden_layers + 2)
    all_hidden_states = [
        jax.random.normal(k, (B, S, H), dtype=jnp.float32)
        for k in keys[: num_hidden_layers + 1]
    ]

    # Default module init: nn.Parameter(torch.tensor([1]*n))
    layer_weights = jnp.ones((n_sel,), dtype=jnp.float32)

    out = weighted_layer_pooling(all_hidden_states, layer_weights, layer_start)
    out = jax.block_until_ready(out)
    ref = weighted_layer_pooling_ref(all_hidden_states, layer_weights, layer_start)
    assert out.shape == (B, S, H)
    assert jnp.allclose(out, ref, atol=1e-5, rtol=1e-5)

    # Non-uniform weights (checks the wrapper-side normalization is correct).
    lw2 = jax.random.uniform(keys[-1], (n_sel,), dtype=jnp.float32) + 0.5
    out2 = jax.block_until_ready(
        weighted_layer_pooling(all_hidden_states, lw2, layer_start)
    )
    ref2 = weighted_layer_pooling_ref(all_hidden_states, lw2, layer_start)
    assert jnp.allclose(out2, ref2, atol=1e-5, rtol=1e-5)

    print("KERNEL_OK")
</pallas_src>

<mosaic_0001>
module attributes {stable_mosaic.version = 11 : i64} {
  func.func @_wlp_kernel(%arg0: i32, %arg1: memref<9xf32, #tpu.memory_space<smem>>, %arg2: memref<1x512xf32, #tpu.memory_space<vmem>>, %arg3: memref<1x512xf32, #tpu.memory_space<vmem>>, %arg4: memref<1x512xf32, #tpu.memory_space<vmem>>, %arg5: memref<1x512xf32, #tpu.memory_space<vmem>>, %arg6: memref<1x512xf32, #tpu.memory_space<vmem>>, %arg7: memref<1x512xf32, #tpu.memory_space<vmem>>, %arg8: memref<1x512xf32, #tpu.memory_space<vmem>>, %arg9: memref<1x512xf32, #tpu.memory_space<vmem>>, %arg10: memref<1x512xf32, #tpu.memory_space<vmem>>, %arg11: memref<1x512xf32, #tpu.memory_space<vmem>>) attributes {dimension_semantics = [#tpu.dimension_semantics<parallel>], iteration_bounds = array<i64: 1>, scalar_prefetch = 0 : i64, scratch_operands = 0 : i64, tpu.core_type = #tpu.core_type<tc>, window_params = [{transform_indices = @transform_0, window_bounds = array<i64: 9>}, {transform_indices = @transform_1, window_bounds = array<i64: 1, 512>}, {transform_indices = @transform_2, window_bounds = array<i64: 1, 512>}, {transform_indices = @transform_3, window_bounds = array<i64: 1, 512>}, {transform_indices = @transform_4, window_bounds = array<i64: 1, 512>}, {transform_indices = @transform_5, window_bounds = array<i64: 1, 512>}, {transform_indices = @transform_6, window_bounds = array<i64: 1, 512>}, {transform_indices = @transform_7, window_bounds = array<i64: 1, 512>}, {transform_indices = @transform_8, window_bounds = array<i64: 1, 512>}, {transform_indices = @transform_9, window_bounds = array<i64: 1, 512>}, {transform_indices = @transform_10, window_bounds = array<i64: 1, 512>}]} {
    %c0 = arith.constant 0 : index
    %c0_0 = arith.constant 0 : index
    %0 = vector.load %arg2[%c0, %c0_0] : memref<1x512xf32, #tpu.memory_space<vmem>>, vector<1x512xf32>
    %c0_1 = arith.constant 0 : index
    %1 = memref.load %arg1[%c0_1] : memref<9xf32, #tpu.memory_space<smem>>
    %2 = vector.broadcast %1 : f32 to vector<1x512xf32>
    %3 = arith.mulf %0, %2 : vector<1x512xf32>
    %c0_2 = arith.constant 0 : index
    %c0_3 = arith.constant 0 : index
    %4 = vector.load %arg3[%c0_2, %c0_3] : memref<1x512xf32, #tpu.memory_space<vmem>>, vector<1x512xf32>
    %c1 = arith.constant 1 : index
    %5 = memref.load %arg1[%c1] : memref<9xf32, #tpu.memory_space<smem>>
    %6 = vector.broadcast %5 : f32 to vector<1x512xf32>
    %7 = arith.mulf %4, %6 : vector<1x512xf32>
    %8 = arith.addf %3, %7 : vector<1x512xf32>
    %c0_4 = arith.constant 0 : index
    %c0_5 = arith.constant 0 : index
    %9 = vector.load %arg4[%c0_4, %c0_5] : memref<1x512xf32, #tpu.memory_space<vmem>>, vector<1x512xf32>
    %c2 = arith.constant 2 : index
    %10 = memref.load %arg1[%c2] : memref<9xf32, #tpu.memory_space<smem>>
    %11 = vector.broadcast %10 : f32 to vector<1x512xf32>
    %12 = arith.mulf %9, %11 : vector<1x512xf32>
    %13 = arith.addf %8, %12 : vector<1x512xf32>
    %c0_6 = arith.constant 0 : index
    %c0_7 = arith.constant 0 : index
    %14 = vector.load %arg5[%c0_6, %c0_7] : memref<1x512xf32, #tpu.memory_space<vmem>>, vector<1x512xf32>
    %c3 = arith.constant 3 : index
    %15 = memref.load %arg1[%c3] : memref<9xf32, #tpu.memory_space<smem>>
    %16 = vector.broadcast %15 : f32 to vector<1x512xf32>
    %17 = arith.mulf %14, %16 : vector<1x512xf32>
    %18 = arith.addf %13, %17 : vector<1x512xf32>
    %c0_8 = arith.constant 0 : index
    %c0_9 = arith.constant 0 : index
    %19 = vector.load %arg6[%c0_8, %c0_9] : memref<1x512xf32, #tpu.memory_space<vmem>>, vector<1x512xf32>
    %c4 = arith.constant 4 : index
    %20 = memref.load %arg1[%c4] : memref<9xf32, #tpu.memory_space<smem>>
    %21 = vector.broadcast %20 : f32 to vector<1x512xf32>
    %22 = arith.mulf %19, %21 : vector<1x512xf32>
    %23 = arith.addf %18, %22 : vector<1x512xf32>
    %c0_10 = arith.constant 0 : index
    %c0_11 = arith.constant 0 : index
    %24 = vector.load %arg7[%c0_10, %c0_11] : memref<1x512xf32, #tpu.memory_space<vmem>>, vector<1x512xf32>
    %c5 = arith.constant 5 : index
    %25 = memref.load %arg1[%c5] : memref<9xf32, #tpu.memory_space<smem>>
    %26 = vector.broadcast %25 : f32 to vector<1x512xf32>
    %27 = arith.mulf %24, %26 : vector<1x512xf32>
    %28 = arith.addf %23, %27 : vector<1x512xf32>
    %c0_12 = arith.constant 0 : index
    %c0_13 = arith.constant 0 : index
    %29 = vector.load %arg8[%c0_12, %c0_13] : memref<1x512xf32, #tpu.memory_space<vmem>>, vector<1x512xf32>
    %c6 = arith.constant 6 : index
    %30 = memref.load %arg1[%c6] : memref<9xf32, #tpu.memory_space<smem>>
    %31 = vector.broadcast %30 : f32 to vector<1x512xf32>
    %32 = arith.mulf %29, %31 : vector<1x512xf32>
    %33 = arith.addf %28, %32 : vector<1x512xf32>
    %c0_14 = arith.constant 0 : index
    %c0_15 = arith.constant 0 : index
    %34 = vector.load %arg9[%c0_14, %c0_15] : memref<1x512xf32, #tpu.memory_space<vmem>>, vector<1x512xf32>
    %c7 = arith.constant 7 : index
    %35 = memref.load %arg1[%c7] : memref<9xf32, #tpu.memory_space<smem>>
    %36 = vector.broadcast %35 : f32 to vector<1x512xf32>
    %37 = arith.mulf %34, %36 : vector<1x512xf32>
    %38 = arith.addf %33, %37 : vector<1x512xf32>
    %c0_16 = arith.constant 0 : index
    %c0_17 = arith.constant 0 : index
    %39 = vector.load %arg10[%c0_16, %c0_17] : memref<1x512xf32, #tpu.memory_space<vmem>>, vector<1x512xf32>
    %c8 = arith.constant 8 : index
    %40 = memref.load %arg1[%c8] : memref<9xf32, #tpu.memory_space<smem>>
    %41 = vector.broadcast %40 : f32 to vector<1x512xf32>
    %42 = arith.mulf %39, %41 : vector<1x512xf32>
    %43 = arith.addf %38, %42 : vector<1x512xf32>
    %c0_18 = arith.constant 0 : index
    %c0_19 = arith.constant 0 : index
    %44 = vector.load %arg11[%c0_18, %c0_19] : memref<1x512xf32, #tpu.memory_space<vmem>>, vector<1x512xf32>
    tpu.vector_store %arg11[%c0_18, %c0_19], %43 {strides = array<i32>} : memref<1x512xf32, #tpu.memory_space<vmem>>, vector<1x512xf32>,
    return
  }
  func.func @transform_0(%arg0: i32) -> i32 {
    %c0_i32 = arith.constant 0 : i32
    %c0_i32_0 = arith.constant 0 : i32
    return %c0_i32 : i32
  }
  func.func @transform_1(%arg0: i32) -> (i32, i32) {
    %c0_i32 = arith.constant 0 : i32
    %c0_i32_0 = arith.constant 0 : i32
    return %arg0, %c0_i32 : i32, i32
  }
  func.func @transform_2(%arg0: i32) -> (i32, i32) {
    %c0_i32 = arith.constant 0 : i32
    %c0_i32_0 = arith.constant 0 : i32
    return %arg0, %c0_i32 : i32, i32
  }
  func.func @transform_3(%arg0: i32) -> (i32, i32) {
    %c0_i32 = arith.constant 0 : i32
    %c0_i32_0 = arith.constant 0 : i32
    return %arg0, %c0_i32 : i32, i32
  }
  func.func @transform_4(%arg0: i32) -> (i32, i32) {
    %c0_i32 = arith.constant 0 : i32
    %c0_i32_0 = arith.constant 0 : i32
    return %arg0, %c0_i32 : i32, i32
  }
  func.func @transform_5(%arg0: i32) -> (i32, i32) {
    %c0_i32 = arith.constant 0 : i32
    %c0_i32_0 = arith.constant 0 : i32
    return %arg0, %c0_i32 : i32, i32
  }
  func.func @transform_6(%arg0: i32) -> (i32, i32) {
    %c0_i32 = arith.constant 0 : i32
    %c0_i32_0 = arith.constant 0 : i32
    return %arg0, %c0_i32 : i32, i32
  }
  func.func @transform_7(%arg0: i32) -> (i32, i32) {
    %c0_i32 = arith.constant 0 : i32
    %c0_i32_0 = arith.constant 0 : i32
    return %arg0, %c0_i32 : i32, i32
  }
  func.func @transform_8(%arg0: i32) -> (i32, i32) {
    %c0_i32 = arith.constant 0 : i32
    %c0_i32_0 = arith.constant 0 : i32
    return %arg0, %c0_i32 : i32, i32
  }
  func.func @transform_9(%arg0: i32) -> (i32, i32) {
    %c0_i32 = arith.constant 0 : i32
    %c0_i32_0 = arith.constant 0 : i32
    return %arg0, %c0_i32 : i32, i32
  }
  func.func @transform_10(%arg0: i32) -> (i32, i32) {
    %c0_i32 = arith.constant 0 : i32
    %c0_i32_0 = arith.constant 0 : i32
    return %arg0, %c0_i32 : i32, i32
  }
}

</mosaic_0001>

<bundles_post_ra>
// kernel: tpu_custom_call.1
= control target key start
LH: loop header
LB: loop body
LE: loop exit
PB: predicated region body
PF: predicated region fallthrough
CT: control target
= control target key end

     0   :  { %15 = vsyncpa [#allocation5], 0  ;;  %s420_s0 = inlined_call_operand.hbm [shape: f32[9], index: 0, kind: input, shape index: {}]   ;;  %s421_s1 = inlined_call_operand.hbm [shape: f32[1,512], index: 1, kind: input, shape index: {}]   ;;  %s422_s2 = inlined_call_operand.hbm [shape: f32[1,512], index: 2, kind: input, shape index: {}]   ;;  %s423_s3 = inlined_call_operand.vmem [shape: f32[1,512], index: 3, kind: input, shape index: {}]   ;;  %s424_s4 = inlined_call_operand.hbm [shape: f32[1,512], index: 4, kind: input, shape index: {}]   ;;  %s425_s5 = inlined_call_operand.vmem [shape: f32[1,512], index: 5, kind: input, shape index: {}]   ;;  %s426_s6 = inlined_call_operand.hbm [shape: f32[1,512], index: 6, kind: input, shape index: {}]   ;;  %s427_s7 = inlined_call_operand.vmem [shape: f32[1,512], index: 7, kind: input, shape index: {}]   ;;  %s428_s8 = inlined_call_operand.hbm [shape: f32[1,512], index: 8, kind: input, shape index: {}]   ;;  %s429_s9 = inlined_call_operand.vmem [shape: f32[1,512], index: 9, kind: input, shape index: {}]   ;;  %s430_s10 = inlined_call_operand.hbm [shape: f32[1,512], index: 10, kind: output, shape index: {}]  }
   0x1   :  { %16 = vsyncpa [#allocation3], 0 }
   0x2   :  { %17 = vsyncpa [#allocation8], 0 }
   0x3   :  { %18 = vsyncpa [#allocation11], 0 }
   0x4   :  { %19 = vsyncpa [#allocation4], 0  ;;  %s325_s13 = smov [#allocation7]   ;;  %s326_s15 = smov [#allocation10]  }
   0x5   :  { %s44_s14 = sshll.u32 %s325_s13, 4  ;;  %s68_s16 = sshll.u32 %s326_s15, 4  ;;  %s45_s14 = int_to_ptr.vmem [resolvable:$true] %s44_s14  ;;  %s69_s16 = int_to_ptr.vmem [resolvable:$true] %s68_s16 }
   0x6   :  { %s195_s17 = scalar_lea.vmem %s45_s14, 64  ;;  %p200_p1 = scmp.lt.s32.totalorder %s45_s14, %s45_s14 }
   0x7   :  { %p196_p0 = scmp.ne.s32.totalorder %s45_s14, %s195_s17  ;;  %p201_p2 = scmp.lt.s32.totalorder %s195_s17, %s195_s17 }
   0x9   :  { %p202_p3 = por %p201_p2, %p200_p1 }
   0xb   :  { %p203_p4 = pnand %p202_p3, %p196_p0 }
   0xd   :  { %206 = shalt.err (!%p203_p4)
}
   0xe   :  { %47 = dma.hbm_to_vmem [thread:$0]  %s422_s2, 64, %s45_s14, [#allocation8]  }
   0xf   :  { %s215_s20 = scalar_lea.vmem %s69_s16, 64  ;;  %p220_p6 = scmp.lt.s32.totalorder %s69_s16, %s69_s16 }
  0x10   :  { %p216_p5 = scmp.ne.s32.totalorder %s69_s16, %s215_s20  ;;  %p221_p7 = scmp.lt.s32.totalorder %s215_s20, %s215_s20 }
  0x12   :  { %p222_p8 = por %p221_p7, %p220_p6 }
  0x14   :  { %p223_p9 = pnand %p222_p8, %p216_p5 }
  0x16   :  { %226 = shalt.err (!%p223_p9)
}
  0x17   :  { %71 = dma.hbm_to_vmem [thread:$0]  %s426_s6, 64, %s69_s16, [#allocation11]  }
  0x18   :  { %s327_s23 = smov [#allocation2]   ;;  %s328_s26 = smov [#allocation6]  }
  0x19   :  { %27 = dma.hbm_to_smem %s420_s0, 16, %s327_s23, [#allocation5]  }
  0x1a   :  { %s34_s27 = sshll.u32 %s328_s26, 4  ;;  %s329_s2 = smov [#allocation9]   ;;  %s35_s27 = int_to_ptr.vmem [resolvable:$true] %s34_s27 }
  0x1b   :  { %s56_s28 = sshll.u32 %s329_s2, 4  ;;  %s243_s29 = scalar_lea.vmem %s35_s27, 64  ;;  %s57_s28 = int_to_ptr.vmem [resolvable:$true] %s56_s28 }
  0x1c   :  { %p244_p10 = scmp.ne.s32.totalorder %s35_s27, %s243_s29  ;;  %p248_p11 = scmp.lt.s32.totalorder %s35_s27, %s35_s27 }
  0x1d   :  { %p249_p12 = scmp.lt.s32.totalorder %s243_s29, %s243_s29 }
  0x1f   :  { %p250_p13 = por %p249_p12, %p248_p11 }
  0x21   :  { %p251_p0 = pnand %p250_p13, %p244_p10 }
  0x23   :  { %254 = shalt.err (!%p251_p0)
}
  0x24   :  { %37 = dma.hbm_to_vmem [thread:$0]  %s421_s1, 64, %s35_s27, [#allocation3]  }
  0x25   :  { %s263_s6 = scalar_lea.vmem %s57_s28, 64  ;;  %p268_p2 = scmp.lt.s32.totalorder %s57_s28, %s57_s28 }
  0x26   :  { %p264_p1 = scmp.ne.s32.totalorder %s57_s28, %s263_s6  ;;  %p269_p3 = scmp.lt.s32.totalorder %s263_s6, %s263_s6 }
  0x28   :  { %p270_p4 = por %p269_p3, %p268_p2 }
  0x2a   :  { %p271_p5 = pnand %p270_p4, %p264_p1 }
  0x2c   :  { %274 = shalt.err (!%p271_p5)
}
  0x2d   :  { %59 = dma.hbm_to_vmem [thread:$0]  %s424_s4, 64, %s57_s28, [#allocation8]  }
  0x2e   :  { %s330_s13 = smov [#allocation12]  }
  0x2f   :  { %s80_s14 = sshll.u32 %s330_s13, 4  ;;  %s81_s14 = int_to_ptr.vmem [resolvable:$true] %s80_s14 }
  0x30   :  { %s283_s15 = scalar_lea.vmem %s81_s14, 64  ;;  %p288_p7 = scmp.lt.s32.totalorder %s81_s14, %s81_s14 }
  0x31   :  { %p284_p6 = scmp.ne.s32.totalorder %s81_s14, %s283_s15  ;;  %p289_p8 = scmp.lt.s32.totalorder %s283_s15, %s283_s15 }
  0x33   :  { %p290_p9 = por %p289_p8, %p288_p7 }
  0x35   :  { %p291_p10 = pnand %p290_p9, %p284_p6 }
  0x37   :  { %294 = shalt.err (!%p291_p10)
}
  0x38   :  { %83 = dma.hbm_to_vmem [thread:$0]  %s428_s8, 64, %s81_s14, [#allocation11]  }
  0x39   :  { %315 = dma.done.wait [#allocation5], 16  }
  0x3a   :  { %316 = vsyncadd [#allocation5], 4294967280 }
  0x3b   :  { %317 = dma.done.wait [#allocation3], 64  }
  0x3c   :  { %318 = vsyncadd [#allocation3], 4294967232 }
  0x3d   :  { %319 = dma.done.wait [#allocation8], 128  }
  0x3e   :  { %320 = vsyncadd [#allocation8], 4294967168 }
  0x3f   :  { %321 = dma.done.wait [#allocation11], 128  }
  0x40   :  { %322 = vsyncadd [#allocation11], 4294967168 }
  0x41   :  { %104 = sfence }
  0x42   :  { %s106_s4 = sld [smem:[#allocation2]]  ;;  %v105_v0 = vld [vmem:[#allocation6] sm:$0xf]  ;;  %v109_v1 = vld [vmem:[#allocation7] sm:$0xf]  ;;  %v149_v31 = vlaneseq  ;;  %s331_s29 = smov [#allocation13]  }
  0x43   :  { %s172_s17 = sld [smem:[#allocation2 + $0x1]]  ;;  %v114_v3 = vld [vmem:[%s423_s3] sm:$0xf]  ;;  %v119_v6 = vld [vmem:[#allocation9] sm:$0xf]  ;;  %s160_s30 = sshll.u32 %s331_s29, 4  ;;  %s161_s30 = int_to_ptr.vmem [resolvable:$true] %s160_s30 }
  0x44   :  { %s173_s18 = sld [smem:[#allocation2 + $0x2]]  ;;  %v124_v11 = vld [vmem:[%s425_s5] sm:$0xf]  ;;  %v129_v15 = vld [vmem:[#allocation10] sm:$0xf]  ;;  %vm151_vm0 = vcmp.lt.s32.totalorder %v149_v31, 512  ;;  %p300_p12 = scmp.lt.s32.totalorder %s161_s30, %s161_s30 }
  0x45   :  { %s174_s19 = sld [smem:[#allocation2 + $0x3]]  ;;  %v134_v19 = vld [vmem:[%s427_s7] sm:$0xf]  ;;  %v139_v23 = vld [vmem:[#allocation12] sm:$0xf]  ;;  %s295_s7 = scalar_lea.vmem %s161_s30, 64 }
  0x46   :  { %s175_s20 = sld [smem:[#allocation2 + $0x4]]  ;;  %v144_v27 = vld [vmem:[%s429_s9] sm:$0xf]  ;;  %p296_p11 = scmp.ne.s32.totalorder %s161_s30, %s295_s7 }
  0x47   :  { %s176_s21 = sld [smem:[#allocation2 + $0x5]]  ;;  %p301_p13 = scmp.lt.s32.totalorder %s295_s7, %s295_s7 }
  0x48   :  { %v107_v2 = vstv %s106_s4  ;;  %s177_s23 = sld [smem:[#allocation2 + $0x6]] }
  0x49   :  { %v108_v4 = vmul.f32 %v107_v2, %v105_v0  ;;  %v111_v5 = vstv %s172_s17  ;;  %s178_s24 = sld [smem:[#allocation2 + $0x7]]  ;;  %p302_p0 = por %p301_p13, %p300_p12 }
  0x4a   :  { %v112_v7 = vmul.f32 %v111_v5, %v109_v1  ;;  %v116_v8 = vstv %s173_s18  ;;  %s179_s27 = sld [smem:[#allocation2 + $0x8]] }
  0x4b   :  { %v117_v9 = vmul.f32 %v116_v8, %v114_v3  ;;  %v121_v10 = vstv %s174_s19  ;;  %p303_p1 = pnand %p302_p0, %p296_p11 }
  0x4c   :  { %v113_v12 = vadd.f32 %v112_v7, %v108_v4  ;;  %v122_v13 = vmul.f32 %v121_v10, %v119_v6  ;;  %v126_v14 = vstv %s175_s20 }
  0x4d   :  { %v131_v16 = vstv %s176_s21  ;;  %v127_v18 = vmul.f32 %v126_v14, %v124_v11 }
  0x4e   :  { %v118_v17 = vadd.f32 %v117_v9, %v113_v12  ;;  %v136_v20 = vstv %s177_s23  ;;  %v132_v22 = vmul.f32 %v131_v16, %v129_v15 }
  0x4f   :  { %v141_v24 = vstv %s178_s24  ;;  %v137_v26 = vmul.f32 %v136_v20, %v134_v19 }
  0x50   :  { %v123_v21 = vadd.f32 %v122_v13, %v118_v17  ;;  %v146_v28 = vstv %s179_s27  ;;  %v142_v30 = vmul.f32 %v141_v24, %v139_v23 }
  0x51   :  { %v147_v33 = vmul.f32 %v146_v28, %v144_v27 }
  0x52   :  { %v128_v25 = vadd.f32 %v127_v18, %v123_v21 }
  0x54   :  { %v133_v29 = vadd.f32 %v132_v22, %v128_v25 }
  0x56   :  { %v138_v32 = vadd.f32 %v137_v26, %v133_v29 }
  0x58   :  { %v143_v34 = vadd.f32 %v142_v30, %v138_v32 }
  0x5a   :  { %v148_v35 = vadd.f32 %v147_v33, %v143_v34 }
  0x5c   :  { %153 = vst.msk [vmem:[#allocation13] sm:$0xf] %vm151_vm0, %v148_v35 }
  0x5d   :  { %306 = shalt.err (!%p303_p1)
}
  0x5e   :  { %163 = dma.vmem_to_hbm [thread:$0]  %s161_s30, 64, %s430_s10, [#allocation4]  }
  0x5f   :  { %323 = dma.done.wait [#allocation4], 64  }
  0x60   :  { %324 = vsyncadd [#allocation4], 4294967232 }
  0x61   :  { %167 = vsyncpa [#allocation3], 1 }
  0x62   :  { %168 = vsyncpa [#allocation8], 1 }
  0x63   :  { %169 = vsyncpa [#allocation11], 1 }
  0x64   :  { %170 = vsyncpa [#allocation4], 1 }
  0x65   :  { %171 = vsyncpa [#allocation5], 1 }

</bundles_post_ra>
